<compile_context>
chip_gen: v5e
topology: v5e:2x2
jax: 0.10.0
libtpu: 0.0.40
codegen_flags: <defaults>
</compile_context>

<pallas_src>
import jax
import jax.numpy as jnp
from jax.experimental import pallas as pl
from jax.experimental.pallas import tpu as pltpu


def joint_attention_kernel(x_ref, w1t_ref, b1_ref, w2t_ref, b2_ref,
                           ws_ref, bs_ref, wb1t_ref, bb1_ref, wb2t_ref, bb2_ref,
                           o_ref):
    x = x_ref[...]                                   # (bt, C, HW) f32
    bt, c, hw = x.shape

    # ---------------- channel attention ----------------
    # Hierarchical global-average pool: accumulate 128-lane chunks on the VPU,
    # finish with a single XLU lane reduce (no N=1 MXU ones-matvec).
    chunk = 128
    if hw > chunk:
        n_full = hw // chunk
        acc = x[:, :, :chunk]
        for k in range(1, n_full):
            acc = acc + x[:, :, k * chunk:(k + 1) * chunk]
        pooled = jnp.sum(acc, axis=-1)               # (bt, C)
        if hw % chunk:
            pooled = pooled + jnp.sum(x[:, :, n_full * chunk:], axis=-1)
    else:
        pooled = jnp.sum(x, axis=-1)                 # (bt, C)

    # 1/HW is folded into w1t in the wrapper, so `pooled` is the raw sum.
    h1 = jnp.maximum(
        jnp.dot(pooled, w1t_ref[...], preferred_element_type=jnp.float32)
        + b1_ref[...], 0.0)                          # (bt, Cr)
    y1 = jnp.dot(h1, w2t_ref[...], preferred_element_type=jnp.float32) \
        + b2_ref[...]                                # (bt, C)

    # ---------------- spatial attention -----------------
    # 1x1 shrink conv (C->1): broadcast-multiply + sublane reduce over channels.
    s = jnp.sum(x * ws_ref[...], axis=1) + bs_ref[...]           # (bt, HW)
    h2 = jnp.maximum(
        jnp.dot(s, wb1t_ref[...], preferred_element_type=jnp.float32)
        + bb1_ref[...], 0.0)                         # (bt, HWr)
    y2 = jnp.dot(h2, wb2t_ref[...], preferred_element_type=jnp.float32) \
        + bb2_ref[...]                               # (bt, HW)

    # broadcast add: (bt, C, 1) + (bt, 1, HW) -> (bt, C, HW)
    o_ref[...] = y1[:, :, None] + y2[:, None, :]


def joint_attention(x, params, *, bt=None):
    """x: (B, C, H, W) float32 -> (B, C, H, W) float32."""
    B, C, H, W = x.shape
    HW = H * W
    w1, b1, w2, b2, ws, bs, wb1, bb1, wb2, bb2 = params
    Cr = w1.shape[0]
    HWr = wb1.shape[0]
    f32 = jnp.float32

    # One-time weight prep: pre-transpose, fold 1/HW into w1^T.  No padding needed.
    w1_t = (w1.T / HW).astype(f32)                   # (C, Cr)
    b1_r = b1.reshape(1, Cr).astype(f32)
    w2_t = w2.T.astype(f32)                          # (Cr, C)
    b2_r = b2.reshape(1, C).astype(f32)
    ws_c = ws.reshape(C, 1).astype(f32)
    bs_s = bs.reshape(1, 1).astype(f32)
    wb1_t = wb1.T.astype(f32)                        # (HW, HWr)
    bb1_r = bb1.reshape(1, HWr).astype(f32)
    wb2_t = wb2.T.astype(f32)                        # (HWr, HW)
    bb2_r = bb2.reshape(1, HW).astype(f32)
    # TODO(synk): optionally store wb1_t/wb2_t as bfloat16 (f32 accumulation) to halve
    # weight HBM/VMEM on v6e/v7x; kept f32 here so the strict reference check holds.

    w_bytes = 4 * (C * Cr + Cr + Cr * C + C + C + 1
                   + HW * HWr + HWr + HWr * HW + HW)

    # Device-sized VMEM budget: 7/8 of capacity (~112 MiB v5e/v6e, ~56 MiB v7x).
    try:
        vmem_cap = int(pltpu.get_tpu_info().vmem_capacity_bytes)
    except Exception:
        vmem_cap = 64 << 20
    vmem_budget = vmem_cap - vmem_cap // 8

    # Batch tile: target a large x block (~7 MiB on v7x, ~12 MiB on v5e/v6e), keep
    # >= 2 grid steps for the v7x megacore, keep M sublane-dense when possible, and
    # never collapse to bt=1 for awkward B (partial last block handled by Pallas).
    per_batch = C * HW * 4
    if bt is None:
        target_block = min(12 << 20, vmem_budget // 8)
        bt = max(1, target_block // max(per_batch, 1))
        if B >= 2:
            bt = min(bt, pl.cdiv(B, 2))
        bt = min(bt, B)
        if bt >= 8:
            bt = (bt // 8) * 8
        # Shrink if double-buffered blocks + weights + live temporaries overflow VMEM.
        while bt > 1 and 6 * bt * per_batch + 2 * w_bytes + (4 << 20) > vmem_budget:
            bt = max(1, bt // 2)
    grid = (pl.cdiv(B, bt),)

    x3 = x.reshape(B, C, HW).astype(f32)

    flops = B * (2 * C * HW                       # pool + shrink reductions
                 + 2 * C * Cr + 2 * Cr * C        # channel FCs
                 + 2 * HW * HWr + 2 * HWr * HW    # spatial linears
                 + C * HW)                        # broadcast add
    bytes_accessed = 8 * B * C * HW + w_bytes

    weights = (w1_t, b1_r, w2_t, b2_r, ws_c, bs_s, wb1_t, bb1_r, wb2_t, bb2_r)

    def build(single_buffer_weights):
        def w_spec(a):
            nd = a.ndim
            idx = lambda b, _nd=nd: (0,) * _nd
            if single_buffer_weights:
                # Grid-invariant residents never need a revision DMA; a single
                # buffer halves their VMEM footprint (matters on v7x's 64 MiB).
                return pl.BlockSpec(a.shape, idx, pipeline_mode=pl.Buffered(1))
            return pl.BlockSpec(a.shape, idx)

        return pl.pallas_call(
            joint_attention_kernel,
            out_shape=jax.ShapeDtypeStruct((B, C, HW), f32),
            grid=grid,
            in_specs=[pl.BlockSpec((bt, C, HW), lambda b: (b, 0, 0))]
                     + [w_spec(a) for a in weights],
            out_specs=pl.BlockSpec((bt, C, HW), lambda b: (b, 0, 0)),
            compiler_params=pltpu.CompilerParams(
                dimension_semantics=("parallel",),
                vmem_limit_bytes=int(min(vmem_budget, vmem_cap))),
            cost_estimate=pl.CostEstimate(
                flops=flops, transcendentals=0, bytes_accessed=bytes_accessed),
        )

    try:
        out = build(True)(x3, *weights)
    except Exception:
        # pipeline_mode=pl.Buffered(1) unsupported on this jax/backend: fall back
        # to default double-buffered weights (correctness identical).
        out = build(False)(x3, *weights)

    return out.reshape(B, C, H, W)


def make_params(key, C, H, ch_reduction=16, sp_reduction=8):
    HW = H * H
    Cr = C // ch_reduction
    HWr = HW // sp_reduction
    ks = jax.random.split(key, 10)
    f = lambda k, shape: (0.1 * jax.random.normal(k, shape, jnp.float32))
    # channel attention: Conv2d(C,Cr,1), Conv2d(Cr,C,1)  (1x1 conv == matmul over channels)
    w1 = f(ks[0], (Cr, C)); b1 = f(ks[1], (Cr, 1))
    w2 = f(ks[2], (C, Cr)); b2 = f(ks[3], (C, 1))
    # spatial attention: Conv2d(C,1,1), Linear(HW,HWr), Linear(HWr,HW)
    ws = f(ks[4], (1, C)); bs = f(ks[5], (1, 1))
    wb1 = f(ks[6], (HWr, HW)); bb1 = f(ks[7], (1, HWr))
    wb2 = f(ks[8], (HW, HWr)); bb2 = f(ks[9], (1, HW))
    return (w1, b1, w2, b2, ws, bs, wb1, bb1, wb2, bb2)


def reference_forward(x, params):
    """Pure-JAX reference mirroring the PyTorch forward."""
    w1, b1, w2, b2, ws, bs, wb1, bb1, wb2, bb2 = params
    B, C, H, W = x.shape
    # channel attention
    pooled = x.mean(axis=(2, 3))                                   # (B, C)
    h = jnp.maximum(pooled @ w1.T + b1[:, 0], 0.0)                 # (B, Cr)
    y1 = (h @ w2.T + b2[:, 0])[:, :, None, None]                   # (B, C, 1, 1)
    # spatial attention
    s = jnp.einsum('bchw,oc->bohw', x, ws)[:, 0].reshape(B, -1) + bs[0, 0]   # (B, HW)
    h2 = jnp.maximum(s @ wb1.T + bb1[0], 0.0)                      # (B, HWr)
    y2 = (h2 @ wb2.T + bb2[0]).reshape(B, 1, H, W)                 # (B, 1, H, W)
    return y1 + y2


if __name__ == "__main__":
    B, C, H, W = 2, 32, 16, 16       # channel must be >= 16 (reduction=16 in module)
    key = jax.random.PRNGKey(0)
    kx, kp = jax.random.split(key)
    x = jax.random.normal(kx, (B, C, H, W), jnp.float32)
    params = make_params(kp, C, H)

    out = joint_attention(x, params)
    out = jax.block_until_ready(out)

    ref = reference_forward(x, params)
    assert out.shape == (B, C, H, W)
    assert jnp.allclose(out, ref, atol=1e-3, rtol=1e-3), \
        f"max abs err {jnp.max(jnp.abs(out - ref))}"
    print("KERNEL_OK")
</pallas_src>

<mosaic_0001>
module attributes {stable_mosaic.version = 11 : i64} {
  func.func @joint_attention_kernel(%arg0: i32, %arg1: memref<1x32x256xf32, #tpu.memory_space<vmem>>, %arg2: memref<32x2xf32, #tpu.memory_space<vmem>>, %arg3: memref<1x2xf32, #tpu.memory_space<vmem>>, %arg4: memref<2x32xf32, #tpu.memory_space<vmem>>, %arg5: memref<1x32xf32, #tpu.memory_space<vmem>>, %arg6: memref<32x1xf32, #tpu.memory_space<vmem>>, %arg7: memref<1x1xf32, #tpu.memory_space<vmem>>, %arg8: memref<256x32xf32, #tpu.memory_space<vmem>>, %arg9: memref<1x32xf32, #tpu.memory_space<vmem>>, %arg10: memref<32x256xf32, #tpu.memory_space<vmem>>, %arg11: memref<1x256xf32, #tpu.memory_space<vmem>>, %arg12: memref<1x32x256xf32, #tpu.memory_space<vmem>>) attributes {dimension_semantics = [#tpu.dimension_semantics<parallel>], iteration_bounds = array<i64: 2>, scalar_prefetch = 0 : i64, scratch_operands = 0 : i64, tpu.core_type = #tpu.core_type<tc>, window_params = [{transform_indices = @transform_0, window_bounds = array<i64: 1, 32, 256>}, {pipeline_mode = #tpu.pipeline_mode<synchronous>, transform_indices = @transform_1, window_bounds = array<i64: 32, 2>}, {pipeline_mode = #tpu.pipeline_mode<synchronous>, transform_indices = @transform_2, window_bounds = array<i64: 1, 2>}, {pipeline_mode = #tpu.pipeline_mode<synchronous>, transform_indices = @transform_3, window_bounds = array<i64: 2, 32>}, {pipeline_mode = #tpu.pipeline_mode<synchronous>, transform_indices = @transform_4, window_bounds = array<i64: 1, 32>}, {pipeline_mode = #tpu.pipeline_mode<synchronous>, transform_indices = @transform_5, window_bounds = array<i64: 32, 1>}, {pipeline_mode = #tpu.pipeline_mode<synchronous>, transform_indices = @transform_6, window_bounds = array<i64: 1, 1>}, {pipeline_mode = #tpu.pipeline_mode<synchronous>, transform_indices = @transform_7, window_bounds = array<i64: 256, 32>}, {pipeline_mode = #tpu.pipeline_mode<synchronous>, transform_indices = @transform_8, window_bounds = array<i64: 1, 32>}, {pipeline_mode = #tpu.pipeline_mode<synchronous>, transform_indices = @transform_9, window_bounds = array<i64: 32, 256>}, {pipeline_mode = #tpu.pipeline_mode<synchronous>, transform_indices = @transform_10, window_bounds = array<i64: 1, 256>}, {transform_indices = @transform_11, window_bounds = array<i64: 1, 32, 256>}]} {
    %c0 = arith.constant 0 : index
    %c0_0 = arith.constant 0 : index
    %c0_1 = arith.constant 0 : index
    %0 = vector.load %arg1[%c0, %c0_0, %c0_1] : memref<1x32x256xf32, #tpu.memory_space<vmem>>, vector<1x32x256xf32>
    %1 = vector.extract_strided_slice %0 {offsets = [0, 0, 0], sizes = [1, 32, 128], strides = [1, 1, 1]} : vector<1x32x256xf32> to vector<1x32x128xf32>
    %2 = vector.extract_strided_slice %0 {offsets = [0, 0, 128], sizes = [1, 32, 128], strides = [1, 1, 1]} : vector<1x32x256xf32> to vector<1x32x128xf32>
    %3 = arith.addf %1, %2 : vector<1x32x128xf32>
    %cst = arith.constant dense<0.000000e+00> : vector<1x32xf32>
    %4 = vector.multi_reduction <add>, %3, %cst [2] : vector<1x32x128xf32> to vector<1x32xf32>
    %c0_2 = arith.constant 0 : index
    %c0_3 = arith.constant 0 : index
    %5 = vector.load %arg2[%c0_2, %c0_3] : memref<32x2xf32, #tpu.memory_space<vmem>>, vector<32x2xf32>
    %cst_4 = arith.constant dense<0.000000e+00> : vector<1x2xf32>
    %6 = tpu.matmul %4, %5, %cst_4 {dimension_numbers = #tpu.dot_dimension_numbers<[1], [0], [0], [1], [0, 0, 1, 1], [], []>} : vector<1x32xf32>, vector<32x2xf32>, vector<1x2xf32> -> vector<1x2xf32>
    %c0_5 = arith.constant 0 : index
    %c0_6 = arith.constant 0 : index
    %7 = vector.load %arg3[%c0_5, %c0_6] : memref<1x2xf32, #tpu.memory_space<vmem>>, vector<1x2xf32>
    %8 = arith.addf %6, %7 : vector<1x2xf32>
    %cst_7 = arith.constant 0.000000e+00 : f32
    %9 = vector.broadcast %cst_7 : f32 to vector<1x2xf32>
    %10 = arith.maximumf %8, %9 : vector<1x2xf32>
    %c0_8 = arith.constant 0 : index
    %c0_9 = arith.constant 0 : index
    %11 = vector.load %arg4[%c0_8, %c0_9] : memref<2x32xf32, #tpu.memory_space<vmem>>, vector<2x32xf32>
    %cst_10 = arith.constant dense<0.000000e+00> : vector<1x32xf32>
    %12 = tpu.matmul %10, %11, %cst_10 {dimension_numbers = #tpu.dot_dimension_numbers<[1], [0], [0], [1], [0, 0, 1, 1], [], []>} : vector<1x2xf32>, vector<2x32xf32>, vector<1x32xf32> -> vector<1x32xf32>
    %c0_11 = arith.constant 0 : index
    %c0_12 = arith.constant 0 : index
    %13 = vector.load %arg5[%c0_11, %c0_12] : memref<1x32xf32, #tpu.memory_space<vmem>>, vector<1x32xf32>
    %14 = arith.addf %12, %13 : vector<1x32xf32>
    %c0_13 = arith.constant 0 : index
    %c0_14 = arith.constant 0 : index
    %15 = vector.load %arg6[%c0_13, %c0_14] : memref<32x1xf32, #tpu.memory_space<vmem>>, vector<32x1xf32>
    %16 = vector.shape_cast %15 : vector<32x1xf32> to vector<1x32x1xf32>
    %17 = vector.broadcast %16 : vector<1x32x1xf32> to vector<1x32x256xf32>
    %18 = arith.mulf %0, %17 : vector<1x32x256xf32>
    %cst_15 = arith.constant dense<0.000000e+00> : vector<1x256xf32>
    %19 = vector.multi_reduction <add>, %18, %cst_15 [1] : vector<1x32x256xf32> to vector<1x256xf32>
    %c0_16 = arith.constant 0 : index
    %c0_17 = arith.constant 0 : index
    %20 = vector.load %arg7[%c0_16, %c0_17] : memref<1x1xf32, #tpu.memory_space<vmem>>, vector<1x1xf32>
    %21 = vector.broadcast %20 : vector<1x1xf32> to vector<1x256xf32>
    %22 = arith.addf %19, %21 : vector<1x256xf32>
    %c0_18 = arith.constant 0 : index
    %c0_19 = arith.constant 0 : index
    %23 = vector.load %arg8[%c0_18, %c0_19] : memref<256x32xf32, #tpu.memory_space<vmem>>, vector<256x32xf32>
    %cst_20 = arith.constant dense<0.000000e+00> : vector<1x32xf32>
    %24 = tpu.matmul %22, %23, %cst_20 {dimension_numbers = #tpu.dot_dimension_numbers<[1], [0], [0], [1], [0, 0, 1, 1], [], []>} : vector<1x256xf32>, vector<256x32xf32>, vector<1x32xf32> -> vector<1x32xf32>
    %c0_21 = arith.constant 0 : index
    %c0_22 = arith.constant 0 : index
    %25 = vector.load %arg9[%c0_21, %c0_22] : memref<1x32xf32, #tpu.memory_space<vmem>>, vector<1x32xf32>
    %26 = arith.addf %24, %25 : vector<1x32xf32>
    %cst_23 = arith.constant 0.000000e+00 : f32
    %27 = vector.broadcast %cst_23 : f32 to vector<1x32xf32>
    %28 = arith.maximumf %26, %27 : vector<1x32xf32>
    %c0_24 = arith.constant 0 : index
    %c0_25 = arith.constant 0 : index
    %29 = vector.load %arg10[%c0_24, %c0_25] : memref<32x256xf32, #tpu.memory_space<vmem>>, vector<32x256xf32>
    %cst_26 = arith.constant dense<0.000000e+00> : vector<1x256xf32>
    %30 = tpu.matmul %28, %29, %cst_26 {dimension_numbers = #tpu.dot_dimension_numbers<[1], [0], [0], [1], [0, 0, 1, 1], [], []>} : vector<1x32xf32>, vector<32x256xf32>, vector<1x256xf32> -> vector<1x256xf32>
    %c0_27 = arith.constant 0 : index
    %c0_28 = arith.constant 0 : index
    %31 = vector.load %arg11[%c0_27, %c0_28] : memref<1x256xf32, #tpu.memory_space<vmem>>, vector<1x256xf32>
    %32 = arith.addf %30, %31 : vector<1x256xf32>
    %33 = vector.shape_cast %14 : vector<1x32xf32> to vector<1x32x1xf32>
    %34 = vector.shape_cast %32 : vector<1x256xf32> to vector<1x1x256xf32>
    %35 = vector.broadcast %33 : vector<1x32x1xf32> to vector<1x32x256xf32>
    %36 = vector.broadcast %34 : vector<1x1x256xf32> to vector<1x32x256xf32>
    %37 = arith.addf %35, %36 : vector<1x32x256xf32>
    %c0_29 = arith.constant 0 : index
    %c0_30 = arith.constant 0 : index
    %c0_31 = arith.constant 0 : index
    %38 = vector.load %arg12[%c0_29, %c0_30, %c0_31] : memref<1x32x256xf32, #tpu.memory_space<vmem>>, vector<1x32x256xf32>
    tpu.vector_store %arg12[%c0_29, %c0_30, %c0_31], %37 {strides = array<i32>} : memref<1x32x256xf32, #tpu.memory_space<vmem>>, vector<1x32x256xf32>,
    return
  }
  func.func @transform_0(%arg0: i32) -> (i32, i32, i32) {
    %c0_i32 = arith.constant 0 : i32
    %c0_i32_0 = arith.constant 0 : i32
    %c0_i32_1 = arith.constant 0 : i32
    return %arg0, %c0_i32, %c0_i32_0 : i32, i32, i32
  }
  func.func @transform_1(%arg0: i32) -> (i32, i32) {
    %c0_i32 = arith.constant 0 : i32
    %c0_i32_0 = arith.constant 0 : i32
    %c0_i32_1 = arith.constant 0 : i32
    return %c0_i32, %c0_i32_0 : i32, i32
  }
  func.func @transform_2(%arg0: i32) -> (i32, i32) {
    %c0_i32 = arith.constant 0 : i32
    %c0_i32_0 = arith.constant 0 : i32
    %c0_i32_1 = arith.constant 0 : i32
    return %c0_i32, %c0_i32_0 : i32, i32
  }
  func.func @transform_3(%arg0: i32) -> (i32, i32) {
    %c0_i32 = arith.constant 0 : i32
    %c0_i32_0 = arith.constant 0 : i32
    %c0_i32_1 = arith.constant 0 : i32
    return %c0_i32, %c0_i32_0 : i32, i32
  }
  func.func @transform_4(%arg0: i32) -> (i32, i32) {
    %c0_i32 = arith.constant 0 : i32
    %c0_i32_0 = arith.constant 0 : i32
    %c0_i32_1 = arith.constant 0 : i32
    return %c0_i32, %c0_i32_0 : i32, i32
  }
  func.func @transform_5(%arg0: i32) -> (i32, i32) {
    %c0_i32 = arith.constant 0 : i32
    %c0_i32_0 = arith.constant 0 : i32
    %c0_i32_1 = arith.constant 0 : i32
    return %c0_i32, %c0_i32_0 : i32, i32
  }
  func.func @transform_6(%arg0: i32) -> (i32, i32) {
    %c0_i32 = arith.constant 0 : i32
    %c0_i32_0 = arith.constant 0 : i32
    %c0_i32_1 = arith.constant 0 : i32
    return %c0_i32, %c0_i32_0 : i32, i32
  }
  func.func @transform_7(%arg0: i32) -> (i32, i32) {
    %c0_i32 = arith.constant 0 : i32
    %c0_i32_0 = arith.constant 0 : i32
    %c0_i32_1 = arith.constant 0 : i32
    return %c0_i32, %c0_i32_0 : i32, i32
  }
  func.func @transform_8(%arg0: i32) -> (i32, i32) {
    %c0_i32 = arith.constant 0 : i32
    %c0_i32_0 = arith.constant 0 : i32
    %c0_i32_1 = arith.constant 0 : i32
    return %c0_i32, %c0_i32_0 : i32, i32
  }
  func.func @transform_9(%arg0: i32) -> (i32, i32) {
    %c0_i32 = arith.constant 0 : i32
    %c0_i32_0 = arith.constant 0 : i32
    %c0_i32_1 = arith.constant 0 : i32
    return %c0_i32, %c0_i32_0 : i32, i32
  }
  func.func @transform_10(%arg0: i32) -> (i32, i32) {
    %c0_i32 = arith.constant 0 : i32
    %c0_i32_0 = arith.constant 0 : i32
    %c0_i32_1 = arith.constant 0 : i32
    return %c0_i32, %c0_i32_0 : i32, i32
  }
  func.func @transform_11(%arg0: i32) -> (i32, i32, i32) {
    %c0_i32 = arith.constant 0 : i32
    %c0_i32_0 = arith.constant 0 : i32
    %c0_i32_1 = arith.constant 0 : i32
    return %arg0, %c0_i32, %c0_i32_0 : i32, i32, i32
  }
}

module attributes {stable_mosaic.version = 11 : i64} {
  func.func @joint_attention_kernel(%arg0: i32, %arg1: memref<1x32x256xf32, #tpu.memory_space<vmem>>, %arg2: memref<32x2xf32, #tpu.memory_space<vmem>>, %arg3: memref<1x2xf32, #tpu.memory_space<vmem>>, %arg4: memref<2x32xf32, #tpu.memory_space<vmem>>, %arg5: memref<1x32xf32, #tpu.memory_space<vmem>>, %arg6: memref<32x1xf32, #tpu.memory_space<vmem>>, %arg7: memref<1x1xf32, #tpu.memory_space<vmem>>, %arg8: memref<256x32xf32, #tpu.memory_space<vmem>>, %arg9: memref<1x32xf32, #tpu.memory_space<vmem>>, %arg10: memref<32x256xf32, #tpu.memory_space<vmem>>, %arg11: memref<1x256xf32, #tpu.memory_space<vmem>>, %arg12: memref<1x32x256xf32, #tpu.memory_space<vmem>>) attributes {dimension_semantics = [#tpu.dimension_semantics<parallel>], iteration_bounds = array<i64: 2>, scalar_prefetch = 0 : i64, scratch_operands = 0 : i64, tpu.core_type = #tpu.core_type<tc>, window_params = [{transform_indices = @transform_0, window_bounds = array<i64: 1, 32, 256>}, {pipeline_mode = #tpu.pipeline_mode<synchronous>, transform_indices = @transform_1, window_bounds = array<i64: 32, 2>}, {pipeline_mode = #tpu.pipeline_mode<synchronous>, transform_indices = @transform_2, window_bounds = array<i64: 1, 2>}, {pipeline_mode = #tpu.pipeline_mode<synchronous>, transform_indices = @transform_3, window_bounds = array<i64: 2, 32>}, {pipeline_mode = #tpu.pipeline_mode<synchronous>, transform_indices = @transform_4, window_bounds = array<i64: 1, 32>}, {pipeline_mode = #tpu.pipeline_mode<synchronous>, transform_indices = @transform_5, window_bounds = array<i64: 32, 1>}, {pipeline_mode = #tpu.pipeline_mode<synchronous>, transform_indices = @transform_6, window_bounds = array<i64: 1, 1>}, {pipeline_mode = #tpu.pipeline_mode<synchronous>, transform_indices = @transform_7, window_bounds = array<i64: 256, 32>}, {pipeline_mode = #tpu.pipeline_mode<synchronous>, transform_indices = @transform_8, window_bounds = array<i64: 1, 32>}, {pipeline_mode = #tpu.pipeline_mode<synchronous>, transform_indices = @transform_9, window_bounds = array<i64: 32, 256>}, {pipeline_mode = #tpu.pipeline_mode<synchronous>, transform_indices = @transform_10, window_bounds = array<i64: 1, 256>}, {transform_indices = @transform_11, window_bounds = array<i64: 1, 32, 256>}]} {
    %c0 = arith.constant 0 : index
    %c0_0 = arith.constant 0 : index
    %c0_1 = arith.constant 0 : index
    %0 = vector.load %arg1[%c0, %c0_0, %c0_1] : memref<1x32x256xf32, #tpu.memory_space<vmem>>, vector<1x32x256xf32>
    %1 = vector.extract_strided_slice %0 {offsets = [0, 0, 0], sizes = [1, 32, 128], strides = [1, 1, 1]} : vector<1x32x256xf32> to vector<1x32x128xf32>
    %2 = vector.extract_strided_slice %0 {offsets = [0, 0, 128], sizes = [1, 32, 128], strides = [1, 1, 1]} : vector<1x32x256xf32> to vector<1x32x128xf32>
    %3 = arith.addf %1, %2 : vector<1x32x128xf32>
    %cst = arith.constant dense<0.000000e+00> : vector<1x32xf32>
    %4 = vector.multi_reduction <add>, %3, %cst [2] : vector<1x32x128xf32> to vector<1x32xf32>
    %c0_2 = arith.constant 0 : index
    %c0_3 = arith.constant 0 : index
    %5 = vector.load %arg2[%c0_2, %c0_3] : memref<32x2xf32, #tpu.memory_space<vmem>>, vector<32x2xf32>
    %cst_4 = arith.constant dense<0.000000e+00> : vector<1x2xf32>
    %6 = tpu.matmul %4, %5, %cst_4 {dimension_numbers = #tpu.dot_dimension_numbers<[1], [0], [0], [1], [0, 0, 1, 1], [], []>} : vector<1x32xf32>, vector<32x2xf32>, vector<1x2xf32> -> vector<1x2xf32>
    %c0_5 = arith.constant 0 : index
    %c0_6 = arith.constant 0 : index
    %7 = vector.load %arg3[%c0_5, %c0_6] : memref<1x2xf32, #tpu.memory_space<vmem>>, vector<1x2xf32>
    %8 = arith.addf %6, %7 : vector<1x2xf32>
    %cst_7 = arith.constant 0.000000e+00 : f32
    %9 = vector.broadcast %cst_7 : f32 to vector<1x2xf32>
    %10 = arith.maximumf %8, %9 : vector<1x2xf32>
    %c0_8 = arith.constant 0 : index
    %c0_9 = arith.constant 0 : index
    %11 = vector.load %arg4[%c0_8, %c0_9] : memref<2x32xf32, #tpu.memory_space<vmem>>, vector<2x32xf32>
    %cst_10 = arith.constant dense<0.000000e+00> : vector<1x32xf32>
    %12 = tpu.matmul %10, %11, %cst_10 {dimension_numbers = #tpu.dot_dimension_numbers<[1], [0], [0], [1], [0, 0, 1, 1], [], []>} : vector<1x2xf32>, vector<2x32xf32>, vector<1x32xf32> -> vector<1x32xf32>
    %c0_11 = arith.constant 0 : index
    %c0_12 = arith.constant 0 : index
    %13 = vector.load %arg5[%c0_11, %c0_12] : memref<1x32xf32, #tpu.memory_space<vmem>>, vector<1x32xf32>
    %14 = arith.addf %12, %13 : vector<1x32xf32>
    %c0_13 = arith.constant 0 : index
    %c0_14 = arith.constant 0 : index
    %15 = vector.load %arg6[%c0_13, %c0_14] : memref<32x1xf32, #tpu.memory_space<vmem>>, vector<32x1xf32>
    %16 = vector.shape_cast %15 : vector<32x1xf32> to vector<1x32x1xf32>
    %17 = vector.broadcast %16 : vector<1x32x1xf32> to vector<1x32x256xf32>
    %18 = arith.mulf %0, %17 : vector<1x32x256xf32>
    %cst_15 = arith.constant dense<0.000000e+00> : vector<1x256xf32>
    %19 = vector.multi_reduction <add>, %18, %cst_15 [1] : vector<1x32x256xf32> to vector<1x256xf32>
    %c0_16 = arith.constant 0 : index
    %c0_17 = arith.constant 0 : index
    %20 = vector.load %arg7[%c0_16, %c0_17] : memref<1x1xf32, #tpu.memory_space<vmem>>, vector<1x1xf32>
    %21 = vector.broadcast %20 : vector<1x1xf32> to vector<1x256xf32>
    %22 = arith.addf %19, %21 : vector<1x256xf32>
    %c0_18 = arith.constant 0 : index
    %c0_19 = arith.constant 0 : index
    %23 = vector.load %arg8[%c0_18, %c0_19] : memref<256x32xf32, #tpu.memory_space<vmem>>, vector<256x32xf32>
    %cst_20 = arith.constant dense<0.000000e+00> : vector<1x32xf32>
    %24 = tpu.matmul %22, %23, %cst_20 {dimension_numbers = #tpu.dot_dimension_numbers<[1], [0], [0], [1], [0, 0, 1, 1], [], []>} : vector<1x256xf32>, vector<256x32xf32>, vector<1x32xf32> -> vector<1x32xf32>
    %c0_21 = arith.constant 0 : index
    %c0_22 = arith.constant 0 : index
    %25 = vector.load %arg9[%c0_21, %c0_22] : memref<1x32xf32, #tpu.memory_space<vmem>>, vector<1x32xf32>
    %26 = arith.addf %24, %25 : vector<1x32xf32>
    %cst_23 = arith.constant 0.000000e+00 : f32
    %27 = vector.broadcast %cst_23 : f32 to vector<1x32xf32>
    %28 = arith.maximumf %26, %27 : vector<1x32xf32>
    %c0_24 = arith.constant 0 : index
    %c0_25 = arith.constant 0 : index
    %29 = vector.load %arg10[%c0_24, %c0_25] : memref<32x256xf32, #tpu.memory_space<vmem>>, vector<32x256xf32>
    %cst_26 = arith.constant dense<0.000000e+00> : vector<1x256xf32>
    %30 = tpu.matmul %28, %29, %cst_26 {dimension_numbers = #tpu.dot_dimension_numbers<[1], [0], [0], [1], [0, 0, 1, 1], [], []>} : vector<1x32xf32>, vector<32x256xf32>, vector<1x256xf32> -> vector<1x256xf32>
    %c0_27 = arith.constant 0 : index
    %c0_28 = arith.constant 0 : index
    %31 = vector.load %arg11[%c0_27, %c0_28] : memref<1x256xf32, #tpu.memory_space<vmem>>, vector<1x256xf32>
    %32 = arith.addf %30, %31 : vector<1x256xf32>
    %33 = vector.shape_cast %14 : vector<1x32xf32> to vector<1x32x1xf32>
    %34 = vector.shape_cast %32 : vector<1x256xf32> to vector<1x1x256xf32>
    %35 = vector.broadcast %33 : vector<1x32x1xf32> to vector<1x32x256xf32>
    %36 = vector.broadcast %34 : vector<1x1x256xf32> to vector<1x32x256xf32>
    %37 = arith.addf %35, %36 : vector<1x32x256xf32>
    %c0_29 = arith.constant 0 : index
    %c0_30 = arith.constant 0 : index
    %c0_31 = arith.constant 0 : index
    %38 = vector.load %arg12[%c0_29, %c0_30, %c0_31] : memref<1x32x256xf32, #tpu.memory_space<vmem>>, vector<1x32x256xf32>
    tpu.vector_store %arg12[%c0_29, %c0_30, %c0_31], %37 {strides = array<i32>} : memref<1x32x256xf32, #tpu.memory_space<vmem>>, vector<1x32x256xf32>,
    return
  }
  func.func @transform_0(%arg0: i32) -> (i32, i32, i32) {
    %c0_i32 = arith.constant 0 : i32
    %c0_i32_0 = arith.constant 0 : i32
    %c0_i32_1 = arith.constant 0 : i32
    return %arg0, %c0_i32, %c0_i32_0 : i32, i32, i32
  }
  func.func @transform_1(%arg0: i32) -> (i32, i32) {
    %c0_i32 = arith.constant 0 : i32
    %c0_i32_0 = arith.constant 0 : i32
    %c0_i32_1 = arith.constant 0 : i32
    return %c0_i32, %c0_i32_0 : i32, i32
  }
  func.func @transform_2(%arg0: i32) -> (i32, i32) {
    %c0_i32 = arith.constant 0 : i32
    %c0_i32_0 = arith.constant 0 : i32
    %c0_i32_1 = arith.constant 0 : i32
    return %c0_i32, %c0_i32_0 : i32, i32
  }
  func.func @transform_3(%arg0: i32) -> (i32, i32) {
    %c0_i32 = arith.constant 0 : i32
    %c0_i32_0 = arith.constant 0 : i32
    %c0_i32_1 = arith.constant 0 : i32
    return %c0_i32, %c0_i32_0 : i32, i32
  }
  func.func @transform_4(%arg0: i32) -> (i32, i32) {
    %c0_i32 = arith.constant 0 : i32
    %c0_i32_0 = arith.constant 0 : i32
    %c0_i32_1 = arith.constant 0 : i32
    return %c0_i32, %c0_i32_0 : i32, i32
  }
  func.func @transform_5(%arg0: i32) -> (i32, i32) {
    %c0_i32 = arith.constant 0 : i32
    %c0_i32_0 = arith.constant 0 : i32
    %c0_i32_1 = arith.constant 0 : i32
    return %c0_i32, %c0_i32_0 : i32, i32
  }
  func.func @transform_6(%arg0: i32) -> (i32, i32) {
    %c0_i32 = arith.constant 0 : i32
    %c0_i32_0 = arith.constant 0 : i32
    %c0_i32_1 = arith.constant 0 : i32
    return %c0_i32, %c0_i32_0 : i32, i32
  }
  func.func @transform_7(%arg0: i32) -> (i32, i32) {
    %c0_i32 = arith.constant 0 : i32
    %c0_i32_0 = arith.constant 0 : i32
    %c0_i32_1 = arith.constant 0 : i32
    return %c0_i32, %c0_i32_0 : i32, i32
  }
  func.func @transform_8(%arg0: i32) -> (i32, i32) {
    %c0_i32 = arith.constant 0 : i32
    %c0_i32_0 = arith.constant 0 : i32
    %c0_i32_1 = arith.constant 0 : i32
    return %c0_i32, %c0_i32_0 : i32, i32
  }
  func.func @transform_9(%arg0: i32) -> (i32, i32) {
    %c0_i32 = arith.constant 0 : i32
    %c0_i32_0 = arith.constant 0 : i32
    %c0_i32_1 = arith.constant 0 : i32
    return %c0_i32, %c0_i32_0 : i32, i32
  }
  func.func @transform_10(%arg0: i32) -> (i32, i32) {
    %c0_i32 = arith.constant 0 : i32
    %c0_i32_0 = arith.constant 0 : i32
    %c0_i32_1 = arith.constant 0 : i32
    return %c0_i32, %c0_i32_0 : i32, i32
  }
  func.func @transform_11(%arg0: i32) -> (i32, i32, i32) {
    %c0_i32 = arith.constant 0 : i32
    %c0_i32_0 = arith.constant 0 : i32
    %c0_i32_1 = arith.constant 0 : i32
    return %arg0, %c0_i32, %c0_i32_0 : i32, i32, i32
  }
}

</mosaic_0001>

<bundles_post_ra>
// kernel: tpu_custom_call.1
= control target key start
LH: loop header
LB: loop body
LE: loop exit
PB: predicated region body
PF: predicated region fallthrough
CT: control target
= control target key end

     0   :  { %s1281_s0 = inlined_call_operand.vmem [shape: f32[2,32,256], index: 0, kind: input, shape index: {}]   ;;  %s1282_s1 = inlined_call_operand.vmem [shape: f32[32,2], index: 1, kind: input, shape index: {}]   ;;  %s1283_s2 = inlined_call_operand.vmem [shape: f32[1,2], index: 2, kind: input, shape index: {}]   ;;  %s1284_s3 = inlined_call_operand.vmem [shape: f32[2,32], index: 3, kind: input, shape index: {}]   ;;  %s1285_s4 = inlined_call_operand.vmem [shape: f32[1,32], index: 4, kind: input, shape index: {}]   ;;  %s1286_s5 = inlined_call_operand.vmem [shape: f32[32,1], index: 5, kind: input, shape index: {}]   ;;  %s1287_s6 = inlined_call_operand.<no memory space> [shape: f32[1,1], index: 6, kind: input, shape index: {}]   ;;  %s1288_s7 = inlined_call_operand.vmem [shape: f32[256,32], index: 7, kind: input, shape index: {}]   ;;  %s1289_s8 = inlined_call_operand.vmem [shape: f32[1,32], index: 8, kind: input, shape index: {}]   ;;  %s1290_s9 = inlined_call_operand.vmem [shape: f32[32,256], index: 9, kind: input, shape index: {}]   ;;  %s1291_s10 = inlined_call_operand.vmem [shape: f32[1,256], index: 10, kind: input, shape index: {}]   ;;  %s1292_s11 = inlined_call_operand.hbm [shape: f32[2,32,256], index: 11, kind: output, shape index: {}]  }
   0x1   :  { %v16_v0 = vstv %s1287_s6 }
   0x2   :  { %17 = vst [vmem:[#allocation2] sm:$0x1] %v16_v0 }
   0x3   :  { %18 = vsyncpa [#allocation4], 0 }
   0x4   :  { %20 = vsyncpa [#allocation4 + $0x1], 0  ;;  %s995_s19 = smov 0   ;;  %s997_s20 = smov 0  }
   0x5   :  { %s999_s21 = smov 0   ;;  %s1001_s22 = smov 0  }
   0x6 LB: > { %s1016_s6 = sadd.s32 4294967295, %s927_s22   ;;  %s796_s23 = sadd.s32 4294967294, %s927_s22   ;;  %s927_s22 = sphi %s1001_s22, %s1298_s22   ;;  %s923_s21 = sphi %s999_s21, %s1297_s21   ;;  %s919_s20 = sphi %s997_s20, %s1296_s20   ;;  %s915_s19 = sphi %s995_s19, %s1295_s19  }
   0x7   : > { %s1020_s24 = sadd.s32 1, %s927_s22   ;;  %s269_s25 = sadd.s32 1, %s923_s21 }
   0x8   : > { %s266_s26 = ssub.s32 %s927_s22, %s1020_s24  ;;  %p279_p0 = scmp.ne.s32.totalorder %s923_s21, %s919_s20 }
   0x9   : > { %p267_p1 = scmp.eq.s32.totalorder %s266_s26, 0  ;;  %p280_p2 = scmp.eq.s32.totalorder %s1016_s6, 1 }
   0xa   : > { %p285_p3 = scmp.ne.s32.totalorder %s919_s20, %s915_s19  ;;  %p286_p4 = scmp.eq.s32.totalorder %s796_s23, 1 }
   0xb   : > { %s1031_s27 = scalar_select %p267_p1, %s923_s21, %s269_s25  }
   0xc   : > { %p1033_p5 = por %p280_p2, %p279_p0  ;;  %p1037_p6 = por %p286_p4, %p285_p3 }
   0xd   : > { %p799_p7 = scmp.ge.s32.totalorder %s927_s22, 1  ;;  %p342_p8 = scmp.lt.s32.totalorder %s927_s22, 3 }
   0xf   : > { %p343_p9 = pnand %p799_p7, %p342_p8 }
  0x10   : > { %p382_p10 = scmp.lt.s32.totalorder (!%p343_p9), %s1016_s6, 1  ;;  %s885_s16 = scalar_lea.hbm (!%p343_p9), %s1292_s11, 128 }
  0x11   : > { %346 = sbr.rel (%p343_p9) target bundleno = 548 (0x224), region = 64 }
  0x16   : > { %v929_v1 = vmov 0   ;;  %s383_s30 = scalar_select %p382_p10, %s1016_s6, 1  ;;  %v485_v12 = vld [vmem:[%s1286_s5] sm:$0xff]  ;;  %v486_v15 = vld [vmem:[%s1286_s5 + $0x8] sm:$0xff]  ;;  %v487_v16 = vld [vmem:[%s1286_s5 + $0x10] sm:$0xff]  ;;  %v416_v34 = vlaneseq  ;;  %vm421_vm0 = vcmask 130112  }
  0x17   : > { %858 = vset.pattern.permute.xlu0 %v929_v1  ;;  %859 = vset.pattern.permute.xlu1 %v929_v1  ;;  %v488_v17 = vld [vmem:[%s1286_s5 + $0x18] sm:$0xff]  ;;  %v535_v18 = vld [vmem:[#allocation2] sm:$0x1]  ;;  %v409_v20 = vld [vmem:[%s1282_s1 + $0x10] sm:$0xff]  ;;  %vm425_vm1 = vcmask 195712   ;;  %vm429_vm2 = vcmask 261312  }
  0x18   : > { %857 = vset.pattern.permute.xlu2 %v929_v1  ;;  %s813_s12 = sshll.u32 %s383_s30, 6  ;;  %v410_v19 = vld [vmem:[%s1282_s1 + $0x18] sm:$0xff]  ;;  %v408_v21 = vld [vmem:[%s1282_s1 + $0x8] sm:$0xff]  ;;  %v407_v22 = vld [vmem:[%s1282_s1] sm:$0xff]  ;;  %v417_v39 = vand.u32 127, %v416_v34  ;;  %vm431_vm3 = vcmask 261120  }
  0x19   : > { %s386_s15 = scalar_lea.vmem %s1281_s0, %s813_s12  ;;  %491 = vperm.xlu2 %857, %v485_v12   ;;  %446 = vmatpush.msra.mxu0 %v410_v19  ;;  %v559_v23 = vld [vmem:[%s1288_s7 + $0x78] sm:$0xff]  ;;  %v558_v24 = vld [vmem:[%s1288_s7 + $0x70] sm:$0xff]  ;;  %v557_v27 = vld [vmem:[%s1288_s7 + $0x68] sm:$0xff]  ;;  %vm461_vm4 = vcmask 1041408   ;;  %vm457_vm5 = vcmask 15360   ;;  %s379_s12 = sand.u32 1, %s919_s20  }
  0x1a   : > { %v1048_v2 = vld [vmem:[%s386_s15] sm:$0xff]  ;;  %v1050_v3 = vld [vmem:[%s386_s15 + $0x8] sm:$0xff]  ;;  %v1060_v8 = vld [vmem:[%s386_s15 + $0x10] sm:$0xff]  ;;  %577 = vmatpush.msra.mxu2 %v559_v23  ;;  %v419_v40 = vadd.s32 4294967288, %v417_v39  ;;  %v423_v41 = vadd.s32 4294967280, %v417_v39  ;;  %v427_v42 = vadd.s32 4294967272, %v417_v39 }
  0x1b   : > { %v1052_v4 = vld [vmem:[%s386_s15 + $0x20] sm:$0xff]  ;;  %v395_v5 = vadd.f32 %v1050_v3, %v1048_v2  ;;  %v1056_v6 = vld [vmem:[%s386_s15 + $0x28] sm:$0xff]  ;;  %v1062_v9 = vld [vmem:[%s386_s15 + $0x18] sm:$0xff]  ;;  %447 = vmatpush.msra.mxu0 %v409_v20  ;;  %s800_s13 = sshll.u32 %s379_s12, 6 }
  0x1c   : > { %v397_v7 = vadd.f32 %v1056_v6, %v1052_v4  ;;  %v1064_v10 = vld [vmem:[%s386_s15 + $0x30] sm:$0xff]  ;;  %v1066_v11 = vld [vmem:[%s386_s15 + $0x38] sm:$0xff]  ;;  %v396_v13 = vadd.f32 %v1062_v9, %v1060_v8  ;;  %v573_v28 = vld [vmem:[%s1288_s7 + $0xe8] sm:$0xff]  ;;  %578 = vmatpush.msra.mxu2 %v558_v24  ;;  %s381_s14 = scalar_lea.vmem [#allocation3], %s800_s13  ;;  %s814_s15 = sshll.u32 %s1016_s6, 6 }
  0x1d   : > { %399 = vadd.xlane.f32.xlu0 %v395_v5  ;;  %v398_v14 = vadd.f32 %v1066_v11, %v1064_v10  ;;  %448 = vmatpush.msra.mxu0 %v408_v21  ;;  %v575_v25 = vld [vmem:[%s1288_s7 + $0xf8] sm:$0xff]  ;;  %v574_v26 = vld [vmem:[%s1288_s7 + $0xf0] sm:$0xff]  ;;  %v556_v29 = vld [vmem:[%s1288_s7 + $0x60] sm:$0xff]  ;;  %s730_s18 = scalar_lea.hbm %s1292_s11, %s814_s15  ;;  %s731_s23 = sshll.u32 %s381_s14, 4  ;;  %s732_s23 = int_to_ptr.vmem [resolvable:$true] %s731_s23 }
  0x1e   : > { %403 = vadd.xlane.f32.xlu1 %v397_v7  ;;  %597 = vmatpush.msra.mxu3 %v575_v25  ;;  %v572_v30 = vld [vmem:[%s1288_s7 + $0xe0] sm:$0xff]  ;;  %v555_v31 = vld [vmem:[%s1288_s7 + $0x58] sm:$0xff]  ;;  %v554_v33 = vld [vmem:[%s1288_s7 + $0x50] sm:$0xff]  ;;  %s733_s25 = sshll.u32 %s730_s18, 4  ;;  %s719_s6 = scalar_lea.sflag [#allocation4], %s379_s12  ;;  %s734_s25 = int_to_ptr.hbm [resolvable:$true] %s733_s25 }
  0x1f   : > { %449 = vmatpush.msra.mxu0 %v407_v22  ;;  %579 = vmatpush.msra.mxu2 %v557_v27  ;;  %v571_v32 = vld [vmem:[%s1288_s7 + $0xd8] sm:$0xff]  ;;  %v553_v35 = vld [vmem:[%s1288_s7 + $0x48] sm:$0xff]  ;;  %v570_v36 = vld [vmem:[%s1288_s7 + $0xd0] sm:$0xff]  ;;  %s879_s26 = sshra.s32 %s734_s25, 4  ;;  %s880_s26 = int_to_ptr.hbm [resolvable:$true] %s879_s26 }
  0x20   : > { %598 = vmatpush.msra.mxu3 %v574_v26  ;;  %v552_v44 = vld [vmem:[%s1288_s7 + $0x40] sm:$0xff]  ;;  %v569_v45 = vld [vmem:[%s1288_s7 + $0xc8] sm:$0xff]  ;;  %v551_v46 = vld [vmem:[%s1288_s7 + $0x38] sm:$0xff]  ;;  %s881_s30 = scalar_lea.hbm %s880_s26, 64  ;;  %p886_p0 = scmp.lt.s32.totalorder %s880_s26, %s1292_s11 }
  0x21   : > { %496 = vperm.xlu2 %857, %v486_v15   ;;  %580 = vmatpush.msra.mxu2 %v556_v29  ;;  %v568_v50 = vld [vmem:[%s1288_s7 + $0xc0] sm:$0xff]  ;;  %v550_v53 = vld [vmem:[%s1288_s7 + $0x30] sm:$0xff]  ;;  %v567_v54 = vld [vmem:[%s1288_s7 + $0xb8] sm:$0xff]  ;;  %p882_p11 = scmp.ne.s32.totalorder %s880_s26, %s881_s30  ;;  %p887_p1 = scmp.lt.s32.totalorder %s885_s16, %s881_s30 }
  0x22   : > { %599 = vmatpush.msra.mxu3 %v573_v28  ;;  %v549_v58 = vld [vmem:[%s1288_s7 + $0x28] sm:$0xff]  ;;  %v566_v59 = vld [vmem:[%s1288_s7 + $0xb0] sm:$0xff]  ;;  %v548_v61 = vld [vmem:[%s1288_s7 + $0x20] sm:$0xff] }
  0x23   : > { %581 = vmatpush.msra.mxu2 %v555_v31  ;;  %v565_v62 = vld [vmem:[%s1288_s7 + $0xa8] sm:$0xff]  ;;  %v547_v63 = vld [vmem:[%s1288_s7 + $0x18] sm:$0xff]  ;;  %v564_v0 = vld [vmem:[%s1288_s7 + $0xa0] sm:$0xff]  ;;  %p883_p12 = pnand %p882_p11, %p1033_p5  ;;  %p888_p2 = por %p887_p1, %p886_p0 }
  0x24   : > { %600 = vmatpush.msra.mxu3 %v572_v30  ;;  %v546_v1 = vld [vmem:[%s1288_s7 + $0x10] sm:$0xff]  ;;  %v563_v5 = vld [vmem:[%s1288_s7 + $0x98] sm:$0xff]  ;;  %v545_v21 = vld [vmem:[%s1288_s7 + $0x8] sm:$0xff] }
  0x25   : > { %401 = vadd.xlane.f32.xlu0 %v396_v13  ;;  %582 = vmatpush.msra.mxu2 %v554_v33  ;;  %v560_v22 = vld [vmem:[%s1288_s7 + $0x80] sm:$0xff]  ;;  %p884_p13 = pneg %p883_p12 }
  0x26   : > { %405 = vadd.xlane.f32.xlu1 %v398_v14  ;;  %601 = vmatpush.msra.mxu3 %v571_v32 }
  0x27   : > { %583 = vmatpush.msra.mxu2 %v553_v35  ;;  %p889_p3 = pnand %p888_p2, %p884_p13 }
  0x28   : > { %602 = vmatpush.msra.mxu3 %v570_v36 }
  0x29   : > { %538 = vperm.xlu2 %857, %v535_v18   ;;  %584 = vmatpush.msra.mxu2 %v552_v44 }
  0x2a   : > { %603 = vmatpush.msra.mxu3 %v569_v45 }
  0x2b   : > { %585 = vmatpush.msra.mxu2 %v551_v46 }
  0x2c   : > { %604 = vmatpush.msra.mxu3 %v568_v50  ;;  %v623_v50 = vld [vmem:[%s1290_s9 + $0x28] sm:$0xff] }
  0x2d   : > { %586 = vmatpush.msra.mxu2 %v550_v53  ;;  %v618_v53 = vld [vmem:[%s1290_s9] sm:$0xff] }
  0x2e   : > { %605 = vmatpush.msra.mxu3 %v567_v54  ;;  %v619_v54 = vld [vmem:[%s1290_s9 + $0x8] sm:$0xff] }
  0x2f   : > { %587 = vmatpush.msra.mxu2 %v549_v58 }
  0x30   : > { %606 = vmatpush.msra.mxu3 %v566_v59 }
  0x31   : > { %588 = vmatpush.msra.mxu2 %v548_v61 }
  0x32   : > { %607 = vmatpush.msra.mxu3 %v565_v62 }
  0x33   : > { %589 = vmatpush.msra.mxu2 %v547_v63 }
  0x34   : > { %608 = vmatpush.msra.mxu3 %v564_v0 }
  0x35   : > { %590 = vmatpush.msra.mxu2 %v546_v1 }
  0x36   : > { %609 = vmatpush.msra.mxu3 %v563_v5 }
  0x37   : > { %591 = vmatpush.msra.mxu2 %v545_v21 }
  0x39   : > { %501 = vperm.xlu0 %858, %v487_v16  }
  0x3f   : > { %506 = vperm.xlu1 %859, %v488_v17  }
  0x73   : > { %v492_v56 = vpop.permute.xlu2 %491 }
  0x74   : > { %v509_v12 = vmul.f32 %v492_v56, %v1048_v2  ;;  %v510_v13 = vmul.f32 %v492_v56, %v1050_v3  ;;  %v562_v2 = vld [vmem:[%s1288_s7 + $0x90] sm:$0xff]  ;;  %v544_v3 = vld [vmem:[%s1288_s7] sm:$0xff] }
  0x75   : > { %610 = vmatpush.msra.mxu3 %v562_v2  ;;  %592 = vmatpush.msra.mxu2 %v544_v3 }
  0x7b   : > { %v497_v7 = vpop.permute.xlu2 %496 }
  0x7c   : > { %v511_v14 = vmul.f32 %v497_v7, %v1060_v8  ;;  %v512_v15 = vmul.f32 %v497_v7, %v1062_v9 }
  0x7e   : > { %v517_v17 = vadd.f32 %v511_v14, %v509_v12  ;;  %v526_v18 = vadd.f32 %v512_v15, %v510_v13  ;;  %v626_v12 = vld [vmem:[%s1291_s10] sm:$0x3] }
  0x7f   : > { %v628_v13 = vperm.slane %v626_v12, 0  ;;  %v629_v14 = vperm.slane %v626_v12, 1 }
  0x90   : > { %v400_v37 = vpop.xlane.xlu0 %399 }
  0x91   : > { %v404_v38 = vpop.xlane.xlu1 %403  ;;  %v418_v47 = vperm.slane %v400_v37, %v417_v39 }
  0x92   : > { %v424_v51 = vperm.slane %v404_v38, %v423_v41 }
  0x98   : > { %v402_v43 = vpop.xlane.xlu0 %401 }
  0x99   : > { %v420_v48 = vperm.slane %v402_v43, %v419_v40  ;;  %v406_v49 = vpop.xlane.xlu1 %405  ;;  %v539_v40 = vpop.permute.xlu2 %538  ;;  %v411_v43 = vld [vmem:[%s1283_s2] sm:$0x1] }
  0x9a   : > { %v428_v52 = vperm.slane %v406_v49, %v427_v42  ;;  %v541_v41 = vperm.slane %v539_v40, 0  ;;  %v622_v49 = vld [vmem:[%s1290_s9 + $0x20] sm:$0xff] }
  0x9b   : > { %v422_v55 = vsel %vm421_vm0, %v420_v48, %v418_v47  ;;  %v624_v47 = vld [vmem:[%s1290_s9 + $0x30] sm:$0xff]  ;;  %v625_v48 = vld [vmem:[%s1290_s9 + $0x38] sm:$0xff] }
  0x9c   : > { %v426_v57 = vsel %vm425_vm1, %v424_v51, %v422_v55  ;;  %667 = vmatpush.msrb.mxu0 %v625_v48  ;;  %v620_v51 = vld [vmem:[%s1290_s9 + $0x10] sm:$0xff]  ;;  %v677_v55 = vshrl.u32 %v416_v34, 7  ;;  %v456_v34 = vld [vmem:[%s1285_s4] sm:$0x1] }
  0x9d   : > { %v430_v60 = vsel %vm429_vm2, %v428_v52, %v426_v57  ;;  %v621_v52 = vld [vmem:[%s1290_s9 + $0x18] sm:$0xff]  ;;  %v576_v57 = vld [vmem:[%s1289_s8] sm:$0x1] }
  0x9e   : > { %803 = vmatmul.msk.f32.vlgmr.msra.gmra.mxu0 %vm431_vm3, %v430_v60  ;;  %860 = vset.pattern.permute.xlu2 %v677_v55  ;;  %v696_v56 = vadd.s32 24, %v677_v55  ;;  %v684_v5 = vadd.s32 8, %v677_v55  ;;  %v690_v7 = vadd.s32 16, %v677_v55 }
  0x9f   : > { %668 = vmatpush.msrb.mxu0 %v623_v50 }
  0xa0   : > { %863 = vset.pattern.permute.xlu1 %v696_v56  ;;  %864 = vset.pattern.permute.xlu0 %v696_v56 }
  0xa1   : > { %669 = vmatpush.msrb.mxu0 %v621_v52 }
  0xa3   : > { %670 = vmatpush.msrb.mxu0 %v619_v54 }
  0xab   : > { %v502_v16 = vpop.permute.xlu0 %501 }
  0xac   : > { %v513_v19 = vmul.f32 %v502_v16, %v1052_v4  ;;  %v514_v20 = vmul.f32 %v502_v16, %v1056_v6  ;;  %v561_v4 = vld [vmem:[%s1288_s7 + $0x88] sm:$0xff] }
  0xad   : > { %611 = vmatpush.msra.mxu3 %v561_v4 }
  0xae   : > { %v518_v8 = vadd.f32 %v517_v17, %v513_v19  ;;  %v527_v6 = vadd.f32 %v526_v18, %v514_v20 }
  0xaf   : > { %612 = vmatpush.msra.mxu3 %v560_v22 }
  0xb1   : > { %v507_v9 = vpop.permute.xlu1 %506 }
  0xb2   : > { %v515_v23 = vmul.f32 %v507_v9, %v1064_v10  ;;  %v516_v24 = vmul.f32 %v507_v9, %v1066_v11  ;;  %v455_v11 = vld [vmem:[%s1284_s3] sm:$0x3] }
  0xb3   : > { %804 = vmatpush.msk.msra.mxu1 %vm461_vm4, %v455_v11 }
  0xb4   : > { %v519_v25 = vadd.f32 %v518_v8, %v515_v23  ;;  %v528_v26 = vadd.f32 %v527_v6, %v516_v24 }
  0xb5   : > { %647 = vmatpush.msrb.mxu1 %v624_v47 }
  0xb6   : > { %v520_v27 = vrot.slane %v519_v25, 4  ;;  %v529_v28 = vrot.slane %v528_v26, 4 }
  0xb7   : > { %648 = vmatpush.msrb.mxu1 %v622_v49 }
  0xb8   : > { %v521_v29 = vadd.f32 %v520_v27, %v519_v25  ;;  %v530_v30 = vadd.f32 %v529_v28, %v528_v26 }
  0xb9   : > { %649 = vmatpush.msrb.mxu1 %v620_v51 }
  0xba   : > { %v522_v31 = vrot.slane %v521_v29, 2  ;;  %v531_v32 = vrot.slane %v530_v30, 2 }
  0xbb   : > { %650 = vmatpush.msrb.mxu1 %v618_v53 }
  0xbc   : > { %v523_v33 = vadd.f32 %v522_v31, %v521_v29  ;;  %v532_v35 = vadd.f32 %v531_v32, %v530_v30 }
  0xbe   : > { %v524_v36 = vrot.slane %v523_v33, 1  ;;  %v533_v37 = vrot.slane %v532_v35, 1 }
  0xc0   : > { %v525_v38 = vadd.f32 %v524_v36, %v523_v33  ;;  %v534_v39 = vadd.f32 %v533_v37, %v532_v35 }
  0xc2   : > { %v542_v10 = vadd.f32 %v541_v41, %v525_v38  ;;  %v543_v42 = vadd.f32 %v541_v41, %v534_v39 }
  0xc4   : > { %593 = vmatmul.f32.vlgmr.msra.gmra.mxu2 %v542_v10  ;;  %613 = vmatmul.f32.vlgmr.msra.gmra.mxu3 %v543_v42 }
 0x11b   : > { %v451_v44 = vpop.f32.mrf.mxu0 }
 0x11c   : > { %v452_v45 = vadd.f32 %v451_v44, %v411_v43 }
 0x11e   : > { %v454_v46 = vmax.f32 %v452_v45, 0.0 }
 0x120   : > { %805 = vmatmul.msk.f32.vlgmr.msra.gmra.mxu1 %vm457_vm5, %v454_v46 }
 0x147   : > { %v594_v58 = vpop.f32.mrf.mxu2  ;;  %v614_v59 = vpop.f32.mrf.mxu3 }
 0x148   : > { %v595_v60 = vadd.f32 %v594_v58, %v576_v57 }
 0x14a   : > { %v615_v61 = vadd.f32 %v614_v59, %v595_v60 }
 0x14c   : > { %v617_v62 = vmax.f32 %v615_v61, 0.0 }
 0x14e   : > { %806 = vmatmul.msk.f32.vlgmr.msrb.gmra.mxu1 %vm431_vm3, %v617_v62  ;;  %807 = vmatmul.msk.f32.vlgmr.msrb.gmra.mxu0 %vm431_vm3, %v617_v62 }
 0x19d   : > { %v482_v63 = vpop.f32.mrf.mxu1 }
 0x19e   : > { %v483_v0 = vadd.f32 %v482_v63, %v456_v34 }
 0x1a0   : > { %v675_v1 = vperm.slane %v483_v0, 0 }
 0x1a2   : > { %698 = vperm.xlu1 %863, %v675_v1   ;;  %680 = vperm.xlu2 %860, %v675_v1  }
 0x1aa   : > { %861 = vset.pattern.permute.xlu2 %v684_v5 }
 0x1b2   : > { %686 = vperm.xlu2 %861, %v675_v1  }
 0x1ba   : > { %862 = vset.pattern.permute.xlu2 %v690_v7 }
 0x1c2   : > { %692 = vperm.xlu2 %862, %v675_v1  }
 0x1cb   : > { %v652_v15 = vpop.f32.mrf.mxu1  ;;  %v672_v16 = vpop.f32.mrf.mxu0 }
 0x1cc   : > { %v653_v17 = vadd.f32 %v652_v15, %v628_v13  ;;  %v673_v18 = vadd.f32 %v672_v16, %v629_v14 }
 0x1ce   : > { %v700_v19 = vperm.slane %v653_v17, 0  ;;  %v701_v20 = vperm.slane %v673_v18, 0 }
 0x1fc   : > { %v681_v21 = vpop.permute.xlu2 %680 }
 0x1fd   : > { %v702_v2 = vadd.f32 %v700_v19, %v681_v21  ;;  %v703_v3 = vadd.f32 %v701_v20, %v681_v21 }
 0x1ff   : > { %710 = vst [vmem:[%s381_s14] sm:$0xff] %v702_v2 }
 0x200   : > { %711 = vst [vmem:[%s381_s14 + $0x8] sm:$0xff] %v703_v3 }
 0x20c   : > { %v687_v4 = vpop.permute.xlu2 %686 }
 0x20d   : > { %v704_v8 = vadd.f32 %v700_v19, %v687_v4  ;;  %v705_v6 = vadd.f32 %v701_v20, %v687_v4 }
 0x20f   : > { %712 = vst [vmem:[%s381_s14 + $0x10] sm:$0xff] %v704_v8 }
 0x210   : > { %713 = vst [vmem:[%s381_s14 + $0x18] sm:$0xff] %v705_v6 }
 0x214   : > { %v699_v9 = vpop.permute.xlu1 %698 }
 0x215   : > { %v708_v22 = vadd.f32 %v700_v19, %v699_v9  ;;  %v709_v23 = vadd.f32 %v701_v20, %v699_v9 }
 0x217   : > { %716 = vst [vmem:[%s381_s14 + $0x30] sm:$0xff] %v708_v22 }
 0x218   : > { %717 = vst [vmem:[%s381_s14 + $0x38] sm:$0xff] %v709_v23 }
 0x21c   : > { %v693_v24 = vpop.permute.xlu2 %692 }
 0x21d   : > { %v706_v25 = vadd.f32 %v700_v19, %v693_v24  ;;  %v707_v26 = vadd.f32 %v701_v20, %v693_v24 }
 0x21f   : > { %714 = vst [vmem:[%s381_s14 + $0x20] sm:$0xff] %v706_v25 }
 0x220   : > { %715 = vst [vmem:[%s381_s14 + $0x28] sm:$0xff] %v707_v26 }
 0x221   : > { %892 = shalt.err (!%p889_p3)
}
 0x222   : > { %s930_s12 = smov 256   ;;  %s931_s14 = smov 16  }
 0x223   : > { %815 = dma.vmem_to_hbm [thread:$0]  (%p1033_p5), %s732_s23, 1024, %s734_s25, %s719_s6, %s930_s12, %s930_s12, %s931_s14  }
 0x224 PF: > { %p821_p4 = scmp.ge.s32.totalorder %s927_s22, 2  ;;  %s748_s13 = sand.u32 1, %s915_s19  }
 0x225   : > { %s749_s15 = scalar_lea.sflag [#allocation4], %s748_s13 }
 0x226   : > { %p818_p7 = pnand %p821_p4, %p1037_p6 }
 0x228   : > { %p819_p8 = pneg %p818_p7 }
 0x22a   : > { %910 = dma.done.wait (%p819_p8), %s749_s15, 1024  }
 0x22b   : > { %912 = vsyncadd (%p819_p8), %s749_s15, 4294966272  ;;  %p23_p9 = scmp.ge.s32.totalorder %s1020_s24, 4   ;;  %s1295_s19 = smov %s919_s20 }
 0x22c   : > { %s1296_s20 = smov %s923_s21  ;;  %s1297_s21 = smov %s1031_s27 }
 0x22d   : > { %s1298_s22 = smov %s1020_s24  ;;  %25 = sbr.rel (!%p23_p9) target bundleno = 6 (0x6), region = 99 }
 0x232   :  { %755 = vsyncpa [#allocation4], 1 }
 0x233   :  { %757 = vsyncpa [#allocation4 + $0x1], 1 }

// kernel: tpu_custom_call.1
= control target key start
LH: loop header
LB: loop body
LE: loop exit
PB: predicated region body
PF: predicated region fallthrough
CT: control target
= control target key end

     0   :  { %s1281_s0 = inlined_call_operand.vmem [shape: f32[2,32,256], index: 0, kind: input, shape index: {}]   ;;  %s1282_s1 = inlined_call_operand.vmem [shape: f32[32,2], index: 1, kind: input, shape index: {}]   ;;  %s1283_s2 = inlined_call_operand.vmem [shape: f32[1,2], index: 2, kind: input, shape index: {}]   ;;  %s1284_s3 = inlined_call_operand.vmem [shape: f32[2,32], index: 3, kind: input, shape index: {}]   ;;  %s1285_s4 = inlined_call_operand.vmem [shape: f32[1,32], index: 4, kind: input, shape index: {}]   ;;  %s1286_s5 = inlined_call_operand.vmem [shape: f32[32,1], index: 5, kind: input, shape index: {}]   ;;  %s1287_s6 = inlined_call_operand.<no memory space> [shape: f32[1,1], index: 6, kind: input, shape index: {}]   ;;  %s1288_s7 = inlined_call_operand.vmem [shape: f32[256,32], index: 7, kind: input, shape index: {}]   ;;  %s1289_s8 = inlined_call_operand.vmem [shape: f32[1,32], index: 8, kind: input, shape index: {}]   ;;  %s1290_s9 = inlined_call_operand.vmem [shape: f32[32,256], index: 9, kind: input, shape index: {}]   ;;  %s1291_s10 = inlined_call_operand.vmem [shape: f32[1,256], index: 10, kind: input, shape index: {}]   ;;  %s1292_s11 = inlined_call_operand.hbm [shape: f32[2,32,256], index: 11, kind: output, shape index: {}]  }
   0x1   :  { %v16_v0 = vstv %s1287_s6 }
   0x2   :  { %17 = vst [vmem:[#allocation2] sm:$0x1] %v16_v0 }
   0x3   :  { %18 = vsyncpa [#allocation4], 0 }
   0x4   :  { %20 = vsyncpa [#allocation4 + $0x1], 0  ;;  %s995_s19 = smov 0   ;;  %s997_s20 = smov 0  }
   0x5   :  { %s999_s21 = smov 0   ;;  %s1001_s22 = smov 0  }
   0x6 LB: > { %s1016_s6 = sadd.s32 4294967295, %s927_s22   ;;  %s796_s23 = sadd.s32 4294967294, %s927_s22   ;;  %s927_s22 = sphi %s1001_s22, %s1298_s22   ;;  %s923_s21 = sphi %s999_s21, %s1297_s21   ;;  %s919_s20 = sphi %s997_s20, %s1296_s20   ;;  %s915_s19 = sphi %s995_s19, %s1295_s19  }
   0x7   : > { %s1020_s24 = sadd.s32 1, %s927_s22   ;;  %s269_s25 = sadd.s32 1, %s923_s21 }
   0x8   : > { %s266_s26 = ssub.s32 %s927_s22, %s1020_s24  ;;  %p279_p0 = scmp.ne.s32.totalorder %s923_s21, %s919_s20 }
   0x9   : > { %p267_p1 = scmp.eq.s32.totalorder %s266_s26, 0  ;;  %p280_p2 = scmp.eq.s32.totalorder %s1016_s6, 1 }
   0xa   : > { %p285_p3 = scmp.ne.s32.totalorder %s919_s20, %s915_s19  ;;  %p286_p4 = scmp.eq.s32.totalorder %s796_s23, 1 }
   0xb   : > { %s1031_s27 = scalar_select %p267_p1, %s923_s21, %s269_s25  }
   0xc   : > { %p1033_p5 = por %p280_p2, %p279_p0  ;;  %p1037_p6 = por %p286_p4, %p285_p3 }
   0xd   : > { %p799_p7 = scmp.ge.s32.totalorder %s927_s22, 1  ;;  %p342_p8 = scmp.lt.s32.totalorder %s927_s22, 3 }
   0xf   : > { %p343_p9 = pnand %p799_p7, %p342_p8 }
  0x10   : > { %p382_p10 = scmp.lt.s32.totalorder (!%p343_p9), %s1016_s6, 1  ;;  %s885_s16 = scalar_lea.hbm (!%p343_p9), %s1292_s11, 128 }
  0x11   : > { %346 = sbr.rel (%p343_p9) target bundleno = 548 (0x224), region = 64 }
  0x16   : > { %v929_v1 = vmov 0   ;;  %s383_s30 = scalar_select %p382_p10, %s1016_s6, 1  ;;  %v485_v12 = vld [vmem:[%s1286_s5] sm:$0xff]  ;;  %v486_v15 = vld [vmem:[%s1286_s5 + $0x8] sm:$0xff]  ;;  %v487_v16 = vld [vmem:[%s1286_s5 + $0x10] sm:$0xff]  ;;  %v416_v34 = vlaneseq  ;;  %vm421_vm0 = vcmask 130112  }
  0x17   : > { %858 = vset.pattern.permute.xlu0 %v929_v1  ;;  %859 = vset.pattern.permute.xlu1 %v929_v1  ;;  %v488_v17 = vld [vmem:[%s1286_s5 + $0x18] sm:$0xff]  ;;  %v535_v18 = vld [vmem:[#allocation2] sm:$0x1]  ;;  %v409_v20 = vld [vmem:[%s1282_s1 + $0x10] sm:$0xff]  ;;  %vm425_vm1 = vcmask 195712   ;;  %vm429_vm2 = vcmask 261312  }
  0x18   : > { %857 = vset.pattern.permute.xlu2 %v929_v1  ;;  %s813_s12 = sshll.u32 %s383_s30, 6  ;;  %v410_v19 = vld [vmem:[%s1282_s1 + $0x18] sm:$0xff]  ;;  %v408_v21 = vld [vmem:[%s1282_s1 + $0x8] sm:$0xff]  ;;  %v407_v22 = vld [vmem:[%s1282_s1] sm:$0xff]  ;;  %v417_v39 = vand.u32 127, %v416_v34  ;;  %vm431_vm3 = vcmask 261120  }
  0x19   : > { %s386_s15 = scalar_lea.vmem %s1281_s0, %s813_s12  ;;  %491 = vperm.xlu2 %857, %v485_v12   ;;  %446 = vmatpush.msra.mxu0 %v410_v19  ;;  %v559_v23 = vld [vmem:[%s1288_s7 + $0x78] sm:$0xff]  ;;  %v558_v24 = vld [vmem:[%s1288_s7 + $0x70] sm:$0xff]  ;;  %v557_v27 = vld [vmem:[%s1288_s7 + $0x68] sm:$0xff]  ;;  %vm461_vm4 = vcmask 1041408   ;;  %vm457_vm5 = vcmask 15360   ;;  %s379_s12 = sand.u32 1, %s919_s20  }
  0x1a   : > { %v1048_v2 = vld [vmem:[%s386_s15] sm:$0xff]  ;;  %v1050_v3 = vld [vmem:[%s386_s15 + $0x8] sm:$0xff]  ;;  %v1060_v8 = vld [vmem:[%s386_s15 + $0x10] sm:$0xff]  ;;  %577 = vmatpush.msra.mxu2 %v559_v23  ;;  %v419_v40 = vadd.s32 4294967288, %v417_v39  ;;  %v423_v41 = vadd.s32 4294967280, %v417_v39  ;;  %v427_v42 = vadd.s32 4294967272, %v417_v39 }
  0x1b   : > { %v1052_v4 = vld [vmem:[%s386_s15 + $0x20] sm:$0xff]  ;;  %v395_v5 = vadd.f32 %v1050_v3, %v1048_v2  ;;  %v1056_v6 = vld [vmem:[%s386_s15 + $0x28] sm:$0xff]  ;;  %v1062_v9 = vld [vmem:[%s386_s15 + $0x18] sm:$0xff]  ;;  %447 = vmatpush.msra.mxu0 %v409_v20  ;;  %s800_s13 = sshll.u32 %s379_s12, 6 }
  0x1c   : > { %v397_v7 = vadd.f32 %v1056_v6, %v1052_v4  ;;  %v1064_v10 = vld [vmem:[%s386_s15 + $0x30] sm:$0xff]  ;;  %v1066_v11 = vld [vmem:[%s386_s15 + $0x38] sm:$0xff]  ;;  %v396_v13 = vadd.f32 %v1062_v9, %v1060_v8  ;;  %v573_v28 = vld [vmem:[%s1288_s7 + $0xe8] sm:$0xff]  ;;  %578 = vmatpush.msra.mxu2 %v558_v24  ;;  %s381_s14 = scalar_lea.vmem [#allocation3], %s800_s13  ;;  %s814_s15 = sshll.u32 %s1016_s6, 6 }
  0x1d   : > { %399 = vadd.xlane.f32.xlu0 %v395_v5  ;;  %v398_v14 = vadd.f32 %v1066_v11, %v1064_v10  ;;  %448 = vmatpush.msra.mxu0 %v408_v21  ;;  %v575_v25 = vld [vmem:[%s1288_s7 + $0xf8] sm:$0xff]  ;;  %v574_v26 = vld [vmem:[%s1288_s7 + $0xf0] sm:$0xff]  ;;  %v556_v29 = vld [vmem:[%s1288_s7 + $0x60] sm:$0xff]  ;;  %s730_s18 = scalar_lea.hbm %s1292_s11, %s814_s15  ;;  %s731_s23 = sshll.u32 %s381_s14, 4  ;;  %s732_s23 = int_to_ptr.vmem [resolvable:$true] %s731_s23 }
  0x1e   : > { %403 = vadd.xlane.f32.xlu1 %v397_v7  ;;  %597 = vmatpush.msra.mxu3 %v575_v25  ;;  %v572_v30 = vld [vmem:[%s1288_s7 + $0xe0] sm:$0xff]  ;;  %v555_v31 = vld [vmem:[%s1288_s7 + $0x58] sm:$0xff]  ;;  %v554_v33 = vld [vmem:[%s1288_s7 + $0x50] sm:$0xff]  ;;  %s733_s25 = sshll.u32 %s730_s18, 4  ;;  %s719_s6 = scalar_lea.sflag [#allocation4], %s379_s12  ;;  %s734_s25 = int_to_ptr.hbm [resolvable:$true] %s733_s25 }
  0x1f   : > { %449 = vmatpush.msra.mxu0 %v407_v22  ;;  %579 = vmatpush.msra.mxu2 %v557_v27  ;;  %v571_v32 = vld [vmem:[%s1288_s7 + $0xd8] sm:$0xff]  ;;  %v553_v35 = vld [vmem:[%s1288_s7 + $0x48] sm:$0xff]  ;;  %v570_v36 = vld [vmem:[%s1288_s7 + $0xd0] sm:$0xff]  ;;  %s879_s26 = sshra.s32 %s734_s25, 4  ;;  %s880_s26 = int_to_ptr.hbm [resolvable:$true] %s879_s26 }
  0x20   : > { %598 = vmatpush.msra.mxu3 %v574_v26  ;;  %v552_v44 = vld [vmem:[%s1288_s7 + $0x40] sm:$0xff]  ;;  %v569_v45 = vld [vmem:[%s1288_s7 + $0xc8] sm:$0xff]  ;;  %v551_v46 = vld [vmem:[%s1288_s7 + $0x38] sm:$0xff]  ;;  %s881_s30 = scalar_lea.hbm %s880_s26, 64  ;;  %p886_p0 = scmp.lt.s32.totalorder %s880_s26, %s1292_s11 }
  0x21   : > { %496 = vperm.xlu2 %857, %v486_v15   ;;  %580 = vmatpush.msra.mxu2 %v556_v29  ;;  %v568_v50 = vld [vmem:[%s1288_s7 + $0xc0] sm:$0xff]  ;;  %v550_v53 = vld [vmem:[%s1288_s7 + $0x30] sm:$0xff]  ;;  %v567_v54 = vld [vmem:[%s1288_s7 + $0xb8] sm:$0xff]  ;;  %p882_p11 = scmp.ne.s32.totalorder %s880_s26, %s881_s30  ;;  %p887_p1 = scmp.lt.s32.totalorder %s885_s16, %s881_s30 }
  0x22   : > { %599 = vmatpush.msra.mxu3 %v573_v28  ;;  %v549_v58 = vld [vmem:[%s1288_s7 + $0x28] sm:$0xff]  ;;  %v566_v59 = vld [vmem:[%s1288_s7 + $0xb0] sm:$0xff]  ;;  %v548_v61 = vld [vmem:[%s1288_s7 + $0x20] sm:$0xff] }
  0x23   : > { %581 = vmatpush.msra.mxu2 %v555_v31  ;;  %v565_v62 = vld [vmem:[%s1288_s7 + $0xa8] sm:$0xff]  ;;  %v547_v63 = vld [vmem:[%s1288_s7 + $0x18] sm:$0xff]  ;;  %v564_v0 = vld [vmem:[%s1288_s7 + $0xa0] sm:$0xff]  ;;  %p883_p12 = pnand %p882_p11, %p1033_p5  ;;  %p888_p2 = por %p887_p1, %p886_p0 }
  0x24   : > { %600 = vmatpush.msra.mxu3 %v572_v30  ;;  %v546_v1 = vld [vmem:[%s1288_s7 + $0x10] sm:$0xff]  ;;  %v563_v5 = vld [vmem:[%s1288_s7 + $0x98] sm:$0xff]  ;;  %v545_v21 = vld [vmem:[%s1288_s7 + $0x8] sm:$0xff] }
  0x25   : > { %401 = vadd.xlane.f32.xlu0 %v396_v13  ;;  %582 = vmatpush.msra.mxu2 %v554_v33  ;;  %v560_v22 = vld [vmem:[%s1288_s7 + $0x80] sm:$0xff]  ;;  %p884_p13 = pneg %p883_p12 }
  0x26   : > { %405 = vadd.xlane.f32.xlu1 %v398_v14  ;;  %601 = vmatpush.msra.mxu3 %v571_v32 }
  0x27   : > { %583 = vmatpush.msra.mxu2 %v553_v35  ;;  %p889_p3 = pnand %p888_p2, %p884_p13 }
  0x28   : > { %602 = vmatpush.msra.mxu3 %v570_v36 }
  0x29   : > { %538 = vperm.xlu2 %857, %v535_v18   ;;  %584 = vmatpush.msra.mxu2 %v552_v44 }
  0x2a   : > { %603 = vmatpush.msra.mxu3 %v569_v45 }
  0x2b   : > { %585 = vmatpush.msra.mxu2 %v551_v46 }
  0x2c   : > { %604 = vmatpush.msra.mxu3 %v568_v50  ;;  %v623_v50 = vld [vmem:[%s1290_s9 + $0x28] sm:$0xff] }
  0x2d   : > { %586 = vmatpush.msra.mxu2 %v550_v53  ;;  %v618_v53 = vld [vmem:[%s1290_s9] sm:$0xff] }
  0x2e   : > { %605 = vmatpush.msra.mxu3 %v567_v54  ;;  %v619_v54 = vld [vmem:[%s1290_s9 + $0x8] sm:$0xff] }
  0x2f   : > { %587 = vmatpush.msra.mxu2 %v549_v58 }
  0x30   : > { %606 = vmatpush.msra.mxu3 %v566_v59 }
  0x31   : > { %588 = vmatpush.msra.mxu2 %v548_v61 }
  0x32   : > { %607 = vmatpush.msra.mxu3 %v565_v62 }
  0x33   : > { %589 = vmatpush.msra.mxu2 %v547_v63 }
  0x34   : > { %608 = vmatpush.msra.mxu3 %v564_v0 }
  0x35   : > { %590 = vmatpush.msra.mxu2 %v546_v1 }
  0x36   : > { %609 = vmatpush.msra.mxu3 %v563_v5 }
  0x37   : > { %591 = vmatpush.msra.mxu2 %v545_v21 }
  0x39   : > { %501 = vperm.xlu0 %858, %v487_v16  }
  0x3f   : > { %506 = vperm.xlu1 %859, %v488_v17  }
  0x73   : > { %v492_v56 = vpop.permute.xlu2 %491 }
  0x74   : > { %v509_v12 = vmul.f32 %v492_v56, %v1048_v2  ;;  %v510_v13 = vmul.f32 %v492_v56, %v1050_v3  ;;  %v562_v2 = vld [vmem:[%s1288_s7 + $0x90] sm:$0xff]  ;;  %v544_v3 = vld [vmem:[%s1288_s7] sm:$0xff] }
  0x75   : > { %610 = vmatpush.msra.mxu3 %v562_v2  ;;  %592 = vmatpush.msra.mxu2 %v544_v3 }
  0x7b   : > { %v497_v7 = vpop.permute.xlu2 %496 }
  0x7c   : > { %v511_v14 = vmul.f32 %v497_v7, %v1060_v8  ;;  %v512_v15 = vmul.f32 %v497_v7, %v1062_v9 }
  0x7e   : > { %v517_v17 = vadd.f32 %v511_v14, %v509_v12  ;;  %v526_v18 = vadd.f32 %v512_v15, %v510_v13  ;;  %v626_v12 = vld [vmem:[%s1291_s10] sm:$0x3] }
  0x7f   : > { %v628_v13 = vperm.slane %v626_v12, 0  ;;  %v629_v14 = vperm.slane %v626_v12, 1 }
  0x90   : > { %v400_v37 = vpop.xlane.xlu0 %399 }
  0x91   : > { %v404_v38 = vpop.xlane.xlu1 %403  ;;  %v418_v47 = vperm.slane %v400_v37, %v417_v39 }
  0x92   : > { %v424_v51 = vperm.slane %v404_v38, %v423_v41 }
  0x98   : > { %v402_v43 = vpop.xlane.xlu0 %401 }
  0x99   : > { %v420_v48 = vperm.slane %v402_v43, %v419_v40  ;;  %v406_v49 = vpop.xlane.xlu1 %405  ;;  %v539_v40 = vpop.permute.xlu2 %538  ;;  %v411_v43 = vld [vmem:[%s1283_s2] sm:$0x1] }
  0x9a   : > { %v428_v52 = vperm.slane %v406_v49, %v427_v42  ;;  %v541_v41 = vperm.slane %v539_v40, 0  ;;  %v622_v49 = vld [vmem:[%s1290_s9 + $0x20] sm:$0xff] }
  0x9b   : > { %v422_v55 = vsel %vm421_vm0, %v420_v48, %v418_v47  ;;  %v624_v47 = vld [vmem:[%s1290_s9 + $0x30] sm:$0xff]  ;;  %v625_v48 = vld [vmem:[%s1290_s9 + $0x38] sm:$0xff] }
  0x9c   : > { %v426_v57 = vsel %vm425_vm1, %v424_v51, %v422_v55  ;;  %667 = vmatpush.msrb.mxu0 %v625_v48  ;;  %v620_v51 = vld [vmem:[%s1290_s9 + $0x10] sm:$0xff]  ;;  %v677_v55 = vshrl.u32 %v416_v34, 7  ;;  %v456_v34 = vld [vmem:[%s1285_s4] sm:$0x1] }
  0x9d   : > { %v430_v60 = vsel %vm429_vm2, %v428_v52, %v426_v57  ;;  %v621_v52 = vld [vmem:[%s1290_s9 + $0x18] sm:$0xff]  ;;  %v576_v57 = vld [vmem:[%s1289_s8] sm:$0x1] }
  0x9e   : > { %803 = vmatmul.msk.f32.vlgmr.msra.gmra.mxu0 %vm431_vm3, %v430_v60  ;;  %860 = vset.pattern.permute.xlu2 %v677_v55  ;;  %v696_v56 = vadd.s32 24, %v677_v55  ;;  %v684_v5 = vadd.s32 8, %v677_v55  ;;  %v690_v7 = vadd.s32 16, %v677_v55 }
  0x9f   : > { %668 = vmatpush.msrb.mxu0 %v623_v50 }
  0xa0   : > { %863 = vset.pattern.permute.xlu1 %v696_v56  ;;  %864 = vset.pattern.permute.xlu0 %v696_v56 }
  0xa1   : > { %669 = vmatpush.msrb.mxu0 %v621_v52 }
  0xa3   : > { %670 = vmatpush.msrb.mxu0 %v619_v54 }
  0xab   : > { %v502_v16 = vpop.permute.xlu0 %501 }
  0xac   : > { %v513_v19 = vmul.f32 %v502_v16, %v1052_v4  ;;  %v514_v20 = vmul.f32 %v502_v16, %v1056_v6  ;;  %v561_v4 = vld [vmem:[%s1288_s7 + $0x88] sm:$0xff] }
  0xad   : > { %611 = vmatpush.msra.mxu3 %v561_v4 }
  0xae   : > { %v518_v8 = vadd.f32 %v517_v17, %v513_v19  ;;  %v527_v6 = vadd.f32 %v526_v18, %v514_v20 }
  0xaf   : > { %612 = vmatpush.msra.mxu3 %v560_v22 }
  0xb1   : > { %v507_v9 = vpop.permute.xlu1 %506 }
  0xb2   : > { %v515_v23 = vmul.f32 %v507_v9, %v1064_v10  ;;  %v516_v24 = vmul.f32 %v507_v9, %v1066_v11  ;;  %v455_v11 = vld [vmem:[%s1284_s3] sm:$0x3] }
  0xb3   : > { %804 = vmatpush.msk.msra.mxu1 %vm461_vm4, %v455_v11 }
  0xb4   : > { %v519_v25 = vadd.f32 %v518_v8, %v515_v23  ;;  %v528_v26 = vadd.f32 %v527_v6, %v516_v24 }
  0xb5   : > { %647 = vmatpush.msrb.mxu1 %v624_v47 }
  0xb6   : > { %v520_v27 = vrot.slane %v519_v25, 4  ;;  %v529_v28 = vrot.slane %v528_v26, 4 }
  0xb7   : > { %648 = vmatpush.msrb.mxu1 %v622_v49 }
  0xb8   : > { %v521_v29 = vadd.f32 %v520_v27, %v519_v25  ;;  %v530_v30 = vadd.f32 %v529_v28, %v528_v26 }
  0xb9   : > { %649 = vmatpush.msrb.mxu1 %v620_v51 }
  0xba   : > { %v522_v31 = vrot.slane %v521_v29, 2  ;;  %v531_v32 = vrot.slane %v530_v30, 2 }
  0xbb   : > { %650 = vmatpush.msrb.mxu1 %v618_v53 }
  0xbc   : > { %v523_v33 = vadd.f32 %v522_v31, %v521_v29  ;;  %v532_v35 = vadd.f32 %v531_v32, %v530_v30 }
  0xbe   : > { %v524_v36 = vrot.slane %v523_v33, 1  ;;  %v533_v37 = vrot.slane %v532_v35, 1 }
  0xc0   : > { %v525_v38 = vadd.f32 %v524_v36, %v523_v33  ;;  %v534_v39 = vadd.f32 %v533_v37, %v532_v35 }
  0xc2   : > { %v542_v10 = vadd.f32 %v541_v41, %v525_v38  ;;  %v543_v42 = vadd.f32 %v541_v41, %v534_v39 }
  0xc4   : > { %593 = vmatmul.f32.vlgmr.msra.gmra.mxu2 %v542_v10  ;;  %613 = vmatmul.f32.vlgmr.msra.gmra.mxu3 %v543_v42 }
 0x11b   : > { %v451_v44 = vpop.f32.mrf.mxu0 }
 0x11c   : > { %v452_v45 = vadd.f32 %v451_v44, %v411_v43 }
 0x11e   : > { %v454_v46 = vmax.f32 %v452_v45, 0.0 }
 0x120   : > { %805 = vmatmul.msk.f32.vlgmr.msra.gmra.mxu1 %vm457_vm5, %v454_v46 }
 0x147   : > { %v594_v58 = vpop.f32.mrf.mxu2  ;;  %v614_v59 = vpop.f32.mrf.mxu3 }
 0x148   : > { %v595_v60 = vadd.f32 %v594_v58, %v576_v57 }
 0x14a   : > { %v615_v61 = vadd.f32 %v614_v59, %v595_v60 }
 0x14c   : > { %v617_v62 = vmax.f32 %v615_v61, 0.0 }
 0x14e   : > { %806 = vmatmul.msk.f32.vlgmr.msrb.gmra.mxu1 %vm431_vm3, %v617_v62  ;;  %807 = vmatmul.msk.f32.vlgmr.msrb.gmra.mxu0 %vm431_vm3, %v617_v62 }
 0x19d   : > { %v482_v63 = vpop.f32.mrf.mxu1 }
 0x19e   : > { %v483_v0 = vadd.f32 %v482_v63, %v456_v34 }
 0x1a0   : > { %v675_v1 = vperm.slane %v483_v0, 0 }
 0x1a2   : > { %698 = vperm.xlu1 %863, %v675_v1   ;;  %680 = vperm.xlu2 %860, %v675_v1  }
 0x1aa   : > { %861 = vset.pattern.permute.xlu2 %v684_v5 }
 0x1b2   : > { %686 = vperm.xlu2 %861, %v675_v1  }
 0x1ba   : > { %862 = vset.pattern.permute.xlu2 %v690_v7 }
 0x1c2   : > { %692 = vperm.xlu2 %862, %v675_v1  }
 0x1cb   : > { %v652_v15 = vpop.f32.mrf.mxu1  ;;  %v672_v16 = vpop.f32.mrf.mxu0 }
 0x1cc   : > { %v653_v17 = vadd.f32 %v652_v15, %v628_v13  ;;  %v673_v18 = vadd.f32 %v672_v16, %v629_v14 }
 0x1ce   : > { %v700_v19 = vperm.slane %v653_v17, 0  ;;  %v701_v20 = vperm.slane %v673_v18, 0 }
 0x1fc   : > { %v681_v21 = vpop.permute.xlu2 %680 }
 0x1fd   : > { %v702_v2 = vadd.f32 %v700_v19, %v681_v21  ;;  %v703_v3 = vadd.f32 %v701_v20, %v681_v21 }
 0x1ff   : > { %710 = vst [vmem:[%s381_s14] sm:$0xff] %v702_v2 }
 0x200   : > { %711 = vst [vmem:[%s381_s14 + $0x8] sm:$0xff] %v703_v3 }
 0x20c   : > { %v687_v4 = vpop.permute.xlu2 %686 }
 0x20d   : > { %v704_v8 = vadd.f32 %v700_v19, %v687_v4  ;;  %v705_v6 = vadd.f32 %v701_v20, %v687_v4 }
 0x20f   : > { %712 = vst [vmem:[%s381_s14 + $0x10] sm:$0xff] %v704_v8 }
 0x210   : > { %713 = vst [vmem:[%s381_s14 + $0x18] sm:$0xff] %v705_v6 }
 0x214   : > { %v699_v9 = vpop.permute.xlu1 %698 }
 0x215   : > { %v708_v22 = vadd.f32 %v700_v19, %v699_v9  ;;  %v709_v23 = vadd.f32 %v701_v20, %v699_v9 }
 0x217   : > { %716 = vst [vmem:[%s381_s14 + $0x30] sm:$0xff] %v708_v22 }
 0x218   : > { %717 = vst [vmem:[%s381_s14 + $0x38] sm:$0xff] %v709_v23 }
 0x21c   : > { %v693_v24 = vpop.permute.xlu2 %692 }
 0x21d   : > { %v706_v25 = vadd.f32 %v700_v19, %v693_v24  ;;  %v707_v26 = vadd.f32 %v701_v20, %v693_v24 }
 0x21f   : > { %714 = vst [vmem:[%s381_s14 + $0x20] sm:$0xff] %v706_v25 }
 0x220   : > { %715 = vst [vmem:[%s381_s14 + $0x28] sm:$0xff] %v707_v26 }
 0x221   : > { %892 = shalt.err (!%p889_p3)
}
 0x222   : > { %s930_s12 = smov 256   ;;  %s931_s14 = smov 16  }
 0x223   : > { %815 = dma.vmem_to_hbm [thread:$0]  (%p1033_p5), %s732_s23, 1024, %s734_s25, %s719_s6, %s930_s12, %s930_s12, %s931_s14  }
 0x224 PF: > { %p821_p4 = scmp.ge.s32.totalorder %s927_s22, 2  ;;  %s748_s13 = sand.u32 1, %s915_s19  }
 0x225   : > { %s749_s15 = scalar_lea.sflag [#allocation4], %s748_s13 }
 0x226   : > { %p818_p7 = pnand %p821_p4, %p1037_p6 }
 0x228   : > { %p819_p8 = pneg %p818_p7 }
 0x22a   : > { %910 = dma.done.wait (%p819_p8), %s749_s15, 1024  }
 0x22b   : > { %912 = vsyncadd (%p819_p8), %s749_s15, 4294966272  ;;  %p23_p9 = scmp.ge.s32.totalorder %s1020_s24, 4   ;;  %s1295_s19 = smov %s919_s20 }
 0x22c   : > { %s1296_s20 = smov %s923_s21  ;;  %s1297_s21 = smov %s1031_s27 }
 0x22d   : > { %s1298_s22 = smov %s1020_s24  ;;  %25 = sbr.rel (!%p23_p9) target bundleno = 6 (0x6), region = 99 }
 0x232   :  { %755 = vsyncpa [#allocation4], 1 }
 0x233   :  { %757 = vsyncpa [#allocation4 + $0x1], 1 }

</bundles_post_ra>
